<compile_context>
chip_gen: v6e
topology: v6e:2x2x1
jax: 0.10.0
libtpu: 0.0.40
codegen_flags: <defaults>
</compile_context>

<pallas_src>
import jax
import jax.numpy as jnp
from jax.experimental import pallas as pl
from jax.experimental.pallas import tpu as pltpu


def _lstm_cell_kernel(x_ref, hfull_ref, c_ref, hprev_ref, m_ref,
                      wx_ref, wh_ref, b_ref, newh_ref, newc_ref):
    """One (batch-tile, hidden-tile) step.

    x_ref     : [bm, D_in]        input rows for this batch tile
    hfull_ref : [bm, H]           full previous hidden state (K axis of matmul)
    c_ref     : [bm, tn]          previous cell state, this hidden tile
    hprev_ref : [bm, tn]          previous hidden state, this hidden tile
    m_ref     : [bm, 1]           per-row mask (binary)
    wx_ref    : [4, D_in, tn]     gate-major input weights
    wh_ref    : [4, H, tn]        gate-major recurrent weights
    b_ref     : [4, 1, tn]        gate-major bias
    newh_ref  : [bm, tn]          output hidden state tile
    newc_ref  : [bm, tn]          output cell state tile
    """
    x = x_ref[...]
    hf = hfull_ref[...]

    def gate(g):
        # [bm, D_in] @ [D_in, tn] + [bm, H] @ [H, tn]  -> f32 accumulator (MXU)
        z = jnp.dot(x, wx_ref[g], preferred_element_type=jnp.float32)
        z = z + jnp.dot(hf, wh_ref[g], preferred_element_type=jnp.float32)
        return z + b_ref[g].astype(jnp.float32)      # [1, tn] broadcasts over rows

    zi = gate(0)
    zj = gate(1)
    zf = gate(2)
    zo = gate(3)

    i = jax.nn.sigmoid(zi)
    f = jax.nn.sigmoid(zf)
    o = jax.nn.sigmoid(zo)

    c_prev = c_ref[...].astype(jnp.float32)
    h_prev = hprev_ref[...].astype(jnp.float32)

    new_c = f * c_prev + i * jnp.tanh(zj)
    new_h = o * jnp.tanh(new_c)                       # activation = tanh (module default)

    # Single select per output (mask is a binary keep/reset padding mask).
    keep = m_ref[...] != 0.0                          # [bm, 1] -> broadcasts over tn
    new_c = jnp.where(keep, new_c, c_prev)
    new_h = jnp.where(keep, new_h, h_prev)

    newh_ref[...] = new_h.astype(newh_ref.dtype)
    newc_ref[...] = new_c.astype(newc_ref.dtype)


def _pick_tile(dim, preferred):
    """Largest tile from `preferred` that divides `dim`, else the full dim
    (full dim always satisfies the (8, 128) block-shape rule)."""
    for t in preferred:
        if dim % t == 0:
            return t
    return dim


def lstm_cell_forward(x, state, mask, weight, bias):
    """Pallas LSTMCell forward.

    x      : [B, D_in]
    state  : (c, h), each [B, H]
    mask   : [B] float (binary keep mask)
    weight : [D_in + H, 4H]   (fused, gates ordered i, j, f, o along 4H)
    bias   : [4H]

    Returns (new_h, (new_c, new_h)), matching the PyTorch module.
    """
    c, h = state
    B, H = c.shape
    D_in = x.shape[1]

    # ---- parameter layout plumbing (a real model would store params in this
    #      gate-major layout; done here once per call for API compatibility) --
    w_x = weight[:D_in].reshape(D_in, 4, H).transpose(1, 0, 2)   # [4, D_in, H]
    w_h = weight[D_in:].reshape(H, 4, H).transpose(1, 0, 2)      # [4, H,   H]
    b_s = bias.reshape(4, 1, H)                                  # [4, 1,   H]
    m2d = mask.reshape(B, 1).astype(x.dtype)                     # [B, 1]

    # ---- tiling ------------------------------------------------------------
    bm = _pick_tile(B, (256, 128, 64, 32, 16, 8))   # batch tile (MXU rows)
    tn = _pick_tile(H, (256, 128))                  # hidden tile (lane-dense)
    grid = (B // bm, H // tn)

    new_h, new_c = pl.pallas_call(
        _lstm_cell_kernel,
        out_shape=(
            jax.ShapeDtypeStruct((B, H), h.dtype),   # new_h
            jax.ShapeDtypeStruct((B, H), c.dtype),   # new_c
        ),
        grid=grid,
        in_specs=[
            pl.BlockSpec((bm, D_in), lambda i, j: (i, 0)),        # x
            pl.BlockSpec((bm, H), lambda i, j: (i, 0)),           # h (full K for matmul)
            pl.BlockSpec((bm, tn), lambda i, j: (i, j)),          # c tile
            pl.BlockSpec((bm, tn), lambda i, j: (i, j)),          # h tile (mask blend)
            pl.BlockSpec((bm, 1), lambda i, j: (i, 0)),           # mask
            pl.BlockSpec((4, D_in, tn), lambda i, j: (0, 0, j)),  # W_x (gate-major)
            pl.BlockSpec((4, H, tn), lambda i, j: (0, 0, j)),     # W_h (gate-major)
            pl.BlockSpec((4, 1, tn), lambda i, j: (0, 0, j)),     # bias (gate-major)
        ],
        out_specs=(
            pl.BlockSpec((bm, tn), lambda i, j: (i, j)),          # new_h
            pl.BlockSpec((bm, tn), lambda i, j: (i, j)),          # new_c
        ),
        # In-place state update: c's HBM buffer is reused for new_c.
        # (h cannot be safely aliased: later hidden-tile grid steps still read
        #  the full previous h for the recurrent matmul.)
        input_output_aliases={2: 1},
        compiler_params=pltpu.CompilerParams(
            dimension_semantics=("parallel", "parallel"),
            vmem_limit_bytes=32 * 1024 * 1024,
        ),
    )(x, h, c, h, m2d, w_x, w_h, b_s)

    return new_h, (new_c, new_h)


def _reference(x, state, mask, weight, bias):
    # Pure-JAX reference mirroring the PyTorch forward exactly.
    c, h = state
    gates = jnp.concatenate([x, h], axis=1) @ weight + bias
    H = c.shape[1]
    comb = gates.reshape(-1, 4, H)
    i, j, f, o = comb[:, 0], comb[:, 1], comb[:, 2], comb[:, 3]
    i, f, o = jax.nn.sigmoid(i), jax.nn.sigmoid(f), jax.nn.sigmoid(o)
    new_c = f * c + i * jnp.tanh(j)
    new_h = o * jnp.tanh(new_c)
    m = mask[:, None]
    new_c = m * new_c + (1.0 - m) * c
    new_h = m * new_h + (1.0 - m) * h
    return new_h, (new_c, new_h)


if __name__ == "__main__":
    B = 8        # batch
    D_IN = 32    # input_size
    H = 32       # output_size (hidden)

    key = jax.random.PRNGKey(0)
    kx, kc, kh, km, kw, kb = jax.random.split(key, 6)

    x = jax.random.normal(kx, (B, D_IN), dtype=jnp.float32)
    c = jax.random.normal(kc, (B, H), dtype=jnp.float32)
    h = jax.random.normal(kh, (B, H), dtype=jnp.float32)
    mask = (jax.random.uniform(km, (B,)) > 0.3).astype(jnp.float32)

    # Deterministic synthetic parameters (orthogonal init in the original;
    # a scaled normal is used here — forward semantics are unaffected).
    weight = 0.1 * jax.random.normal(kw, (D_IN + H, 4 * H), dtype=jnp.float32)
    bias = 0.1 * jax.random.normal(kb, (4 * H,), dtype=jnp.float32)

    # Compute the reference first: the Pallas call aliases (may donate) c.
    ref_h, (ref_c, _) = _reference(x, (c, h), mask, weight, bias)

    fwd = jax.jit(lstm_cell_forward)
    new_h, (new_c, _) = fwd(x, (c, h), mask, weight, bias)
    jax.block_until_ready((new_h, new_c))

    assert jnp.allclose(new_h, ref_h, atol=1e-5, rtol=1e-5)
    assert jnp.allclose(new_c, ref_c, atol=1e-5, rtol=1e-5)

    print("KERNEL_OK")
</pallas_src>

<mosaic_0001>
module attributes {stable_mosaic.version = 11 : i64} {
  func.func @_lstm_cell_kernel(%arg0: i32, %arg1: i32, %arg2: memref<8x32xf32, #tpu.memory_space<vmem>>, %arg3: memref<8x32xf32, #tpu.memory_space<vmem>>, %arg4: memref<8x32xf32, #tpu.memory_space<vmem>>, %arg5: memref<8x32xf32, #tpu.memory_space<vmem>>, %arg6: memref<8x1xf32, #tpu.memory_space<vmem>>, %arg7: memref<4x32x32xf32, #tpu.memory_space<vmem>>, %arg8: memref<4x32x32xf32, #tpu.memory_space<vmem>>, %arg9: memref<4x1x32xf32, #tpu.memory_space<vmem>>, %arg10: memref<8x32xf32, #tpu.memory_space<vmem>>, %arg11: memref<8x32xf32, #tpu.memory_space<vmem>>) attributes {dimension_semantics = [#tpu.dimension_semantics<parallel>, #tpu.dimension_semantics<parallel>], iteration_bounds = array<i64: 1, 1>, scalar_prefetch = 0 : i64, scratch_operands = 0 : i64, tpu.core_type = #tpu.core_type<tc>, window_params = [{transform_indices = @transform_0, window_bounds = array<i64: 8, 32>}, {transform_indices = @transform_1, window_bounds = array<i64: 8, 32>}, {transform_indices = @transform_2, window_bounds = array<i64: 8, 32>}, {transform_indices = @transform_3, window_bounds = array<i64: 8, 32>}, {transform_indices = @transform_4, window_bounds = array<i64: 8, 1>}, {transform_indices = @transform_5, window_bounds = array<i64: 4, 32, 32>}, {transform_indices = @transform_6, window_bounds = array<i64: 4, 32, 32>}, {transform_indices = @transform_7, window_bounds = array<i64: 4, 1, 32>}, {transform_indices = @transform_8, window_bounds = array<i64: 8, 32>}, {transform_indices = @transform_9, window_bounds = array<i64: 8, 32>}]} {
    %c0 = arith.constant 0 : index
    %c0_0 = arith.constant 0 : index
    %0 = vector.load %arg2[%c0, %c0_0] : memref<8x32xf32, #tpu.memory_space<vmem>>, vector<8x32xf32>
    %c0_1 = arith.constant 0 : index
    %c0_2 = arith.constant 0 : index
    %1 = vector.load %arg3[%c0_1, %c0_2] : memref<8x32xf32, #tpu.memory_space<vmem>>, vector<8x32xf32>
    %c0_3 = arith.constant 0 : index
    %c0_4 = arith.constant 0 : index
    %c0_5 = arith.constant 0 : index
    %2 = vector.load %arg7[%c0_3, %c0_4, %c0_5] : memref<4x32x32xf32, #tpu.memory_space<vmem>>, vector<1x32x32xf32>
    %3 = vector.shape_cast %2 : vector<1x32x32xf32> to vector<32x32xf32>
    %cst = arith.constant dense<0.000000e+00> : vector<8x32xf32>
    %4 = tpu.matmul %0, %3, %cst {dimension_numbers = #tpu.dot_dimension_numbers<[1], [0], [0], [1], [0, 0, 1, 1], [], []>} : vector<8x32xf32>, vector<32x32xf32>, vector<8x32xf32> -> vector<8x32xf32>
    %c0_6 = arith.constant 0 : index
    %c0_7 = arith.constant 0 : index
    %c0_8 = arith.constant 0 : index
    %5 = vector.load %arg8[%c0_6, %c0_7, %c0_8] : memref<4x32x32xf32, #tpu.memory_space<vmem>>, vector<1x32x32xf32>
    %6 = vector.shape_cast %5 : vector<1x32x32xf32> to vector<32x32xf32>
    %cst_9 = arith.constant dense<0.000000e+00> : vector<8x32xf32>
    %7 = tpu.matmul %1, %6, %cst_9 {dimension_numbers = #tpu.dot_dimension_numbers<[1], [0], [0], [1], [0, 0, 1, 1], [], []>} : vector<8x32xf32>, vector<32x32xf32>, vector<8x32xf32> -> vector<8x32xf32>
    %8 = arith.addf %4, %7 : vector<8x32xf32>
    %c0_10 = arith.constant 0 : index
    %c0_11 = arith.constant 0 : index
    %c0_12 = arith.constant 0 : index
    %9 = vector.load %arg9[%c0_10, %c0_11, %c0_12] : memref<4x1x32xf32, #tpu.memory_space<vmem>>, vector<1x1x32xf32>
    %10 = vector.shape_cast %9 : vector<1x1x32xf32> to vector<1x32xf32>
    %11 = vector.broadcast %10 : vector<1x32xf32> to vector<8x32xf32>
    %12 = arith.addf %8, %11 : vector<8x32xf32>
    %c1 = arith.constant 1 : index
    %c0_13 = arith.constant 0 : index
    %c0_14 = arith.constant 0 : index
    %13 = vector.load %arg7[%c1, %c0_13, %c0_14] : memref<4x32x32xf32, #tpu.memory_space<vmem>>, vector<1x32x32xf32>
    %14 = vector.shape_cast %13 : vector<1x32x32xf32> to vector<32x32xf32>
    %cst_15 = arith.constant dense<0.000000e+00> : vector<8x32xf32>
    %15 = tpu.matmul %0, %14, %cst_15 {dimension_numbers = #tpu.dot_dimension_numbers<[1], [0], [0], [1], [0, 0, 1, 1], [], []>} : vector<8x32xf32>, vector<32x32xf32>, vector<8x32xf32> -> vector<8x32xf32>
    %c1_16 = arith.constant 1 : index
    %c0_17 = arith.constant 0 : index
    %c0_18 = arith.constant 0 : index
    %16 = vector.load %arg8[%c1_16, %c0_17, %c0_18] : memref<4x32x32xf32, #tpu.memory_space<vmem>>, vector<1x32x32xf32>
    %17 = vector.shape_cast %16 : vector<1x32x32xf32> to vector<32x32xf32>
    %cst_19 = arith.constant dense<0.000000e+00> : vector<8x32xf32>
    %18 = tpu.matmul %1, %17, %cst_19 {dimension_numbers = #tpu.dot_dimension_numbers<[1], [0], [0], [1], [0, 0, 1, 1], [], []>} : vector<8x32xf32>, vector<32x32xf32>, vector<8x32xf32> -> vector<8x32xf32>
    %19 = arith.addf %15, %18 : vector<8x32xf32>
    %c1_20 = arith.constant 1 : index
    %c0_21 = arith.constant 0 : index
    %c0_22 = arith.constant 0 : index
    %20 = vector.load %arg9[%c1_20, %c0_21, %c0_22] : memref<4x1x32xf32, #tpu.memory_space<vmem>>, vector<1x1x32xf32>
    %21 = vector.shape_cast %20 : vector<1x1x32xf32> to vector<1x32xf32>
    %22 = vector.broadcast %21 : vector<1x32xf32> to vector<8x32xf32>
    %23 = arith.addf %19, %22 : vector<8x32xf32>
    %c2 = arith.constant 2 : index
    %c0_23 = arith.constant 0 : index
    %c0_24 = arith.constant 0 : index
    %24 = vector.load %arg7[%c2, %c0_23, %c0_24] : memref<4x32x32xf32, #tpu.memory_space<vmem>>, vector<1x32x32xf32>
    %25 = vector.shape_cast %24 : vector<1x32x32xf32> to vector<32x32xf32>
    %cst_25 = arith.constant dense<0.000000e+00> : vector<8x32xf32>
    %26 = tpu.matmul %0, %25, %cst_25 {dimension_numbers = #tpu.dot_dimension_numbers<[1], [0], [0], [1], [0, 0, 1, 1], [], []>} : vector<8x32xf32>, vector<32x32xf32>, vector<8x32xf32> -> vector<8x32xf32>
    %c2_26 = arith.constant 2 : index
    %c0_27 = arith.constant 0 : index
    %c0_28 = arith.constant 0 : index
    %27 = vector.load %arg8[%c2_26, %c0_27, %c0_28] : memref<4x32x32xf32, #tpu.memory_space<vmem>>, vector<1x32x32xf32>
    %28 = vector.shape_cast %27 : vector<1x32x32xf32> to vector<32x32xf32>
    %cst_29 = arith.constant dense<0.000000e+00> : vector<8x32xf32>
    %29 = tpu.matmul %1, %28, %cst_29 {dimension_numbers = #tpu.dot_dimension_numbers<[1], [0], [0], [1], [0, 0, 1, 1], [], []>} : vector<8x32xf32>, vector<32x32xf32>, vector<8x32xf32> -> vector<8x32xf32>
    %30 = arith.addf %26, %29 : vector<8x32xf32>
    %c2_30 = arith.constant 2 : index
    %c0_31 = arith.constant 0 : index
    %c0_32 = arith.constant 0 : index
    %31 = vector.load %arg9[%c2_30, %c0_31, %c0_32] : memref<4x1x32xf32, #tpu.memory_space<vmem>>, vector<1x1x32xf32>
    %32 = vector.shape_cast %31 : vector<1x1x32xf32> to vector<1x32xf32>
    %33 = vector.broadcast %32 : vector<1x32xf32> to vector<8x32xf32>
    %34 = arith.addf %30, %33 : vector<8x32xf32>
    %c3 = arith.constant 3 : index
    %c0_33 = arith.constant 0 : index
    %c0_34 = arith.constant 0 : index
    %35 = vector.load %arg7[%c3, %c0_33, %c0_34] : memref<4x32x32xf32, #tpu.memory_space<vmem>>, vector<1x32x32xf32>
    %36 = vector.shape_cast %35 : vector<1x32x32xf32> to vector<32x32xf32>
    %cst_35 = arith.constant dense<0.000000e+00> : vector<8x32xf32>
    %37 = tpu.matmul %0, %36, %cst_35 {dimension_numbers = #tpu.dot_dimension_numbers<[1], [0], [0], [1], [0, 0, 1, 1], [], []>} : vector<8x32xf32>, vector<32x32xf32>, vector<8x32xf32> -> vector<8x32xf32>
    %c3_36 = arith.constant 3 : index
    %c0_37 = arith.constant 0 : index
    %c0_38 = arith.constant 0 : index
    %38 = vector.load %arg8[%c3_36, %c0_37, %c0_38] : memref<4x32x32xf32, #tpu.memory_space<vmem>>, vector<1x32x32xf32>
    %39 = vector.shape_cast %38 : vector<1x32x32xf32> to vector<32x32xf32>
    %cst_39 = arith.constant dense<0.000000e+00> : vector<8x32xf32>
    %40 = tpu.matmul %1, %39, %cst_39 {dimension_numbers = #tpu.dot_dimension_numbers<[1], [0], [0], [1], [0, 0, 1, 1], [], []>} : vector<8x32xf32>, vector<32x32xf32>, vector<8x32xf32> -> vector<8x32xf32>
    %41 = arith.addf %37, %40 : vector<8x32xf32>
    %c3_40 = arith.constant 3 : index
    %c0_41 = arith.constant 0 : index
    %c0_42 = arith.constant 0 : index
    %42 = vector.load %arg9[%c3_40, %c0_41, %c0_42] : memref<4x1x32xf32, #tpu.memory_space<vmem>>, vector<1x1x32xf32>
    %43 = vector.shape_cast %42 : vector<1x1x32xf32> to vector<1x32xf32>
    %44 = vector.broadcast %43 : vector<1x32xf32> to vector<8x32xf32>
    %45 = arith.addf %41, %44 : vector<8x32xf32>
    %46 = arith.negf %12 : vector<8x32xf32>
    %47 = math.exp %46 : vector<8x32xf32>
    %cst_43 = arith.constant 1.000000e+00 : f32
    %48 = vector.broadcast %cst_43 : f32 to vector<8x32xf32>
    %49 = arith.addf %48, %47 : vector<8x32xf32>
    %50 = arith.divf %48, %49 : vector<8x32xf32>
    %51 = arith.negf %34 : vector<8x32xf32>
    %52 = math.exp %51 : vector<8x32xf32>
    %cst_44 = arith.constant 1.000000e+00 : f32
    %53 = vector.broadcast %cst_44 : f32 to vector<8x32xf32>
    %54 = arith.addf %53, %52 : vector<8x32xf32>
    %55 = arith.divf %53, %54 : vector<8x32xf32>
    %56 = arith.negf %45 : vector<8x32xf32>
    %57 = math.exp %56 : vector<8x32xf32>
    %cst_45 = arith.constant 1.000000e+00 : f32
    %58 = vector.broadcast %cst_45 : f32 to vector<8x32xf32>
    %59 = arith.addf %58, %57 : vector<8x32xf32>
    %60 = arith.divf %58, %59 : vector<8x32xf32>
    %c0_46 = arith.constant 0 : index
    %c0_47 = arith.constant 0 : index
    %61 = vector.load %arg4[%c0_46, %c0_47] : memref<8x32xf32, #tpu.memory_space<vmem>>, vector<8x32xf32>
    %c0_48 = arith.constant 0 : index
    %c0_49 = arith.constant 0 : index
    %62 = vector.load %arg5[%c0_48, %c0_49] : memref<8x32xf32, #tpu.memory_space<vmem>>, vector<8x32xf32>
    %63 = arith.mulf %55, %61 : vector<8x32xf32>
    %64 = math.tanh %23 : vector<8x32xf32>
    %65 = arith.mulf %50, %64 : vector<8x32xf32>
    %66 = arith.addf %63, %65 : vector<8x32xf32>
    %67 = math.tanh %66 : vector<8x32xf32>
    %68 = arith.mulf %60, %67 : vector<8x32xf32>
    %c0_50 = arith.constant 0 : index
    %c0_51 = arith.constant 0 : index
    %69 = vector.load %arg6[%c0_50, %c0_51] : memref<8x1xf32, #tpu.memory_space<vmem>>, vector<8x1xf32>
    %cst_52 = arith.constant 0.000000e+00 : f32
    %70 = vector.broadcast %cst_52 : f32 to vector<8x1xf32>
    %71 = arith.cmpf one, %69, %70 : vector<8x1xf32>
    %72 = vector.shape_cast %71 : vector<8x1xi1> to vector<8x1xi1>
    %73 = vector.broadcast %72 : vector<8x1xi1> to vector<8x32xi1>
    %74 = arith.select %73, %66, %61 : vector<8x32xi1>, vector<8x32xf32>
    %75 = vector.shape_cast %71 : vector<8x1xi1> to vector<8x1xi1>
    %76 = vector.broadcast %75 : vector<8x1xi1> to vector<8x32xi1>
    %77 = arith.select %76, %68, %62 : vector<8x32xi1>, vector<8x32xf32>
    %c0_53 = arith.constant 0 : index
    %c0_54 = arith.constant 0 : index
    %78 = vector.load %arg10[%c0_53, %c0_54] : memref<8x32xf32, #tpu.memory_space<vmem>>, vector<8x32xf32>
    tpu.vector_store %arg10[%c0_53, %c0_54], %77 {strides = array<i32>} : memref<8x32xf32, #tpu.memory_space<vmem>>, vector<8x32xf32>,
    %c0_55 = arith.constant 0 : index
    %c0_56 = arith.constant 0 : index
    %79 = vector.load %arg11[%c0_55, %c0_56] : memref<8x32xf32, #tpu.memory_space<vmem>>, vector<8x32xf32>
    tpu.vector_store %arg11[%c0_55, %c0_56], %74 {strides = array<i32>} : memref<8x32xf32, #tpu.memory_space<vmem>>, vector<8x32xf32>,
    return
  }
  func.func @transform_0(%arg0: i32, %arg1: i32) -> (i32, i32) {
    %c0_i32 = arith.constant 0 : i32
    %c0_i32_0 = arith.constant 0 : i32
    return %arg0, %c0_i32 : i32, i32
  }
  func.func @transform_1(%arg0: i32, %arg1: i32) -> (i32, i32) {
    %c0_i32 = arith.constant 0 : i32
    %c0_i32_0 = arith.constant 0 : i32
    return %arg0, %c0_i32 : i32, i32
  }
  func.func @transform_2(%arg0: i32, %arg1: i32) -> (i32, i32) {
    %c0_i32 = arith.constant 0 : i32
    return %arg0, %arg1 : i32, i32
  }
  func.func @transform_3(%arg0: i32, %arg1: i32) -> (i32, i32) {
    %c0_i32 = arith.constant 0 : i32
    return %arg0, %arg1 : i32, i32
  }
  func.func @transform_4(%arg0: i32, %arg1: i32) -> (i32, i32) {
    %c0_i32 = arith.constant 0 : i32
    %c0_i32_0 = arith.constant 0 : i32
    return %arg0, %c0_i32 : i32, i32
  }
  func.func @transform_5(%arg0: i32, %arg1: i32) -> (i32, i32, i32) {
    %c0_i32 = arith.constant 0 : i32
    %c0_i32_0 = arith.constant 0 : i32
    %c0_i32_1 = arith.constant 0 : i32
    return %c0_i32, %c0_i32_0, %arg1 : i32, i32, i32
  }
  func.func @transform_6(%arg0: i32, %arg1: i32) -> (i32, i32, i32) {
    %c0_i32 = arith.constant 0 : i32
    %c0_i32_0 = arith.constant 0 : i32
    %c0_i32_1 = arith.constant 0 : i32
    return %c0_i32, %c0_i32_0, %arg1 : i32, i32, i32
  }
  func.func @transform_7(%arg0: i32, %arg1: i32) -> (i32, i32, i32) {
    %c0_i32 = arith.constant 0 : i32
    %c0_i32_0 = arith.constant 0 : i32
    %c0_i32_1 = arith.constant 0 : i32
    return %c0_i32, %c0_i32_0, %arg1 : i32, i32, i32
  }
  func.func @transform_8(%arg0: i32, %arg1: i32) -> (i32, i32) {
    %c0_i32 = arith.constant 0 : i32
    return %arg0, %arg1 : i32, i32
  }
  func.func @transform_9(%arg0: i32, %arg1: i32) -> (i32, i32) {
    %c0_i32 = arith.constant 0 : i32
    return %arg0, %arg1 : i32, i32
  }
}

</mosaic_0001>

<bundles_post_ra>
// kernel: lstm_cell_forward.1
= control target key start
LH: loop header
LB: loop body
LE: loop exit
PB: predicated region body
PF: predicated region fallthrough
CT: control target
= control target key end

     0   :  { %v908_v0 = vmov 0.0   ;;  %vm41_vm0 = vcmask 261120   ;;  %vm909_vm1 = vmmov 0   ;;  %v910_v36 = vmov 0   ;;  %s1160_s6 = inlined_call_operand.vmem [shape: f32[4,32,32], index: 6, kind: input, shape index: {}]   ;;  %s1161_s5 = inlined_call_operand.vmem [shape: f32[4,32,32], index: 5, kind: input, shape index: {}]   ;;  %s1162_s1 = inlined_call_operand.vmem [shape: f32[8,32], index: 1, kind: input, shape index: {}, may-alias: {1,3}]   ;;  %s1163_s0 = inlined_call_operand.vmem [shape: f32[8,32], index: 0, kind: input, shape index: {}]   ;;  %s1164_s4 = inlined_call_operand.vmem [shape: f32[8,1], index: 4, kind: input, shape index: {}]   ;;  %s1165_s7 = inlined_call_operand.vmem [shape: f32[4,1,32], index: 7, kind: input, shape index: {}]   ;;  %s1166_s2 = inlined_call_operand.vmem [shape: f32[8,32], index: 2, kind: input, shape index: {}, may-alias: {2,9}]   ;;  %s1167_s9 = inlined_call_operand.vmem [shape: f32[8,32], index: 9, kind: output, shape index: {1}, may-alias: {2,9}]   ;;  %s1168_s3 = inlined_call_operand.vmem [shape: f32[8,32], index: 3, kind: input, shape index: {}, may-alias: {1,3}]   ;;  %s1169_s8 = inlined_call_operand.vmem [shape: f32[8,32], index: 8, kind: output, shape index: {0}]  }
   0x1   :  { %800 = vmatprep.subr.mxu0 %v908_v0  ;;  %811 = vmatprep.subr.mxu1 %v908_v0  ;;  %v40_v1 = vld [vmem:[%s1160_s6 + $0x18] sm:$0xff]  ;;  %v39_v3 = vld [vmem:[%s1160_s6 + $0x10] sm:$0xff]  ;;  %v38_v5 = vld [vmem:[%s1160_s6 + $0x8] sm:$0xff] }
   0x2   :  { %v36_v2 = vld [vmem:[%s1161_s5 + $0x18] sm:$0xff]  ;;  %801 = vmatpush3.msra.mxu0 %v40_v1  ;;  %v35_v4 = vld [vmem:[%s1161_s5 + $0x10] sm:$0xff]  ;;  %v34_v6 = vld [vmem:[%s1161_s5 + $0x8] sm:$0xff]  ;;  %808 = vmatprep.mubr.msk.f32.mxu0 %vm909_vm1, %v908_v0 }
   0x3   :  { %812 = vmatpush3.msra.mxu1 %v36_v2  ;;  %802 = vmatprep.subr.mxu0 %v908_v0  ;;  %v37_v7 = vld [vmem:[%s1160_s6] sm:$0xff]  ;;  %v728_v11 = vld [vmem:[%s1160_s6 + $0x38] sm:$0xff]  ;;  %v727_v13 = vld [vmem:[%s1160_s6 + $0x30] sm:$0xff] }
   0x4   :  { %813 = vmatprep.subr.mxu1 %v908_v0  ;;  %803 = vmatpush3.msra.mxu0 %v39_v3  ;;  %v33_v8 = vld [vmem:[%s1161_s5] sm:$0xff]  ;;  %v724_v12 = vld [vmem:[%s1161_s5 + $0x38] sm:$0xff]  ;;  %v723_v14 = vld [vmem:[%s1161_s5 + $0x30] sm:$0xff] }
   0x5   :  { %814 = vmatpush3.msra.mxu1 %v35_v4  ;;  %804 = vmatprep.subr.mxu0 %v908_v0  ;;  %v996_v9 = vld [vmem:[%s1162_s1] sm:$0xff]  ;;  %v726_v15 = vld [vmem:[%s1160_s6 + $0x28] sm:$0xff]  ;;  %v740_v19 = vld [vmem:[%s1160_s6 + $0x58] sm:$0xff] }
   0x6   :  { %815 = vmatprep.subr.mxu1 %v908_v0  ;;  %805 = vmatpush3.msra.mxu0 %v38_v5  ;;  %v1001_v10 = vld [vmem:[%s1163_s0] sm:$0xff]  ;;  %v722_v16 = vld [vmem:[%s1161_s5 + $0x28] sm:$0xff]  ;;  %v736_v20 = vld [vmem:[%s1161_s5 + $0x58] sm:$0xff] }
   0x7   :  { %816 = vmatpush3.msra.mxu1 %v34_v6  ;;  %806 = vmatprep.subr.mxu0 %v908_v0  ;;  %v725_v17 = vld [vmem:[%s1160_s6 + $0x20] sm:$0xff]  ;;  %v739_v21 = vld [vmem:[%s1160_s6 + $0x50] sm:$0xff]  ;;  %v738_v23 = vld [vmem:[%s1160_s6 + $0x48] sm:$0xff] }
   0x8   :  { %817 = vmatprep.subr.mxu1 %v908_v0  ;;  %807 = vmatpush3.msra.mxu0 %v37_v7  ;;  %v721_v18 = vld [vmem:[%s1161_s5 + $0x20] sm:$0xff]  ;;  %v735_v22 = vld [vmem:[%s1161_s5 + $0x50] sm:$0xff]  ;;  %v734_v24 = vld [vmem:[%s1161_s5 + $0x48] sm:$0xff] }
   0x9   :  { %818 = vmatpush3.msra.mxu1 %v33_v8  ;;  %819 = vmatprep.mubr.msk.f32.mxu1 %vm909_vm1, %v908_v0  ;;  %v737_v25 = vld [vmem:[%s1160_s6 + $0x40] sm:$0xff]  ;;  %v752_v27 = vld [vmem:[%s1160_s6 + $0x78] sm:$0xff]  ;;  %v751_v29 = vld [vmem:[%s1160_s6 + $0x70] sm:$0xff] }
   0xa   :  { %809 = vmatmul.mubr.msk.f32.vlgmr.msra.gmra.mxu0 %vm41_vm0, %v996_v9  ;;  %820 = vmatmul.mubr.msk.f32.vlgmr.msra.gmra.mxu1 %vm41_vm0, %v1001_v10  ;;  %v733_v26 = vld [vmem:[%s1161_s5 + $0x40] sm:$0xff]  ;;  %v748_v28 = vld [vmem:[%s1161_s5 + $0x78] sm:$0xff]  ;;  %v747_v30 = vld [vmem:[%s1161_s5 + $0x70] sm:$0xff] }
   0xb   :  { %822 = vmatprep.subr.mxu0 %v908_v0  ;;  %833 = vmatprep.subr.mxu1 %v908_v0  ;;  %v750_v31 = vld [vmem:[%s1160_s6 + $0x68] sm:$0xff]  ;;  %v699_v33 = vld [vmem:[%s1164_s4] sm:$0xff] }
   0xc   :  { %823 = vmatpush3.msra.mxu0 %v728_v11  ;;  %834 = vmatpush3.msra.mxu1 %v724_v12  ;;  %v746_v32 = vld [vmem:[%s1161_s5 + $0x68] sm:$0xff]  ;;  %v749_v34 = vld [vmem:[%s1160_s6 + $0x60] sm:$0xff]  ;;  %vm700_vm2 = vcmp.ne.f32.partialorder %v699_v33, 0.0 }
   0xd   :  { %824 = vmatprep.subr.mxu0 %v908_v0  ;;  %835 = vmatprep.subr.mxu1 %v908_v0  ;;  %v745_v35 = vld [vmem:[%s1161_s5 + $0x60] sm:$0xff]  ;;  %v701_v37 = vsel %vm700_vm2, 1, %v910_v36 }
   0xe   :  { %825 = vmatpush3.msra.mxu0 %v727_v13  ;;  %836 = vmatpush3.msra.mxu1 %v723_v14  ;;  %v720_v43 = vld [vmem:[%s1165_s7] ss:$0 sm:$0xff]  ;;  %v744_v52 = vld [vmem:[%s1165_s7 + $0x2] ss:$0 sm:$0xff]  ;;  %v756_v60 = vld [vmem:[%s1165_s7 + $0x3] ss:$0 sm:$0xff] }
   0xf   :  { %826 = vmatprep.subr.mxu0 %v908_v0  ;;  %837 = vmatprep.subr.mxu1 %v908_v0  ;;  %v732_v3 = vld [vmem:[%s1165_s7 + $0x1] ss:$0 sm:$0xff] }
  0x10   :  { %827 = vmatpush3.msra.mxu0 %v726_v15  ;;  %838 = vmatpush3.msra.mxu1 %v722_v16  ;;  %v691_v11 = vld [vmem:[%s1166_s2] sm:$0xff] }
  0x11   :  { %828 = vmatprep.subr.mxu0 %v908_v0  ;;  %839 = vmatprep.subr.mxu1 %v908_v0 }
  0x12   :  { %829 = vmatpush3.msra.mxu0 %v725_v17  ;;  %830 = vmatprep.mubr.msk.f32.mxu0 %vm909_vm1, %v908_v0 }
  0x13   :  { %840 = vmatpush3.msra.mxu1 %v721_v18  ;;  %841 = vmatprep.mubr.msk.f32.mxu1 %vm909_vm1, %v908_v0 }
  0x14   :  { %831 = vmatmul.mubr.msk.f32.vlgmr.msra.gmra.mxu0 %vm41_vm0, %v996_v9  ;;  %842 = vmatmul.mubr.msk.f32.vlgmr.msra.gmra.mxu1 %vm41_vm0, %v1001_v10 }
  0x15   :  { %844 = vmatprep.subr.mxu0 %v908_v0  ;;  %855 = vmatprep.subr.mxu1 %v908_v0 }
  0x16   :  { %845 = vmatpush3.msra.mxu0 %v740_v19  ;;  %856 = vmatpush3.msra.mxu1 %v736_v20 }
  0x17   :  { %846 = vmatprep.subr.mxu0 %v908_v0  ;;  %857 = vmatprep.subr.mxu1 %v908_v0 }
  0x18   :  { %847 = vmatpush3.msra.mxu0 %v739_v21  ;;  %858 = vmatpush3.msra.mxu1 %v735_v22  ;;  %v692_v22 = vld [vmem:[%s1168_s3] sm:$0xff] }
  0x19   :  { %848 = vmatprep.subr.mxu0 %v908_v0  ;;  %859 = vmatprep.subr.mxu1 %v908_v0 }
  0x1a   :  { %849 = vmatpush3.msra.mxu0 %v738_v23  ;;  %860 = vmatpush3.msra.mxu1 %v734_v24 }
  0x1b   :  { %850 = vmatprep.subr.mxu0 %v908_v0  ;;  %861 = vmatprep.subr.mxu1 %v908_v0 }
  0x1c   :  { %851 = vmatpush3.msra.mxu0 %v737_v25  ;;  %852 = vmatprep.mubr.msk.f32.mxu0 %vm909_vm1, %v908_v0 }
  0x1d   :  { %862 = vmatpush3.msra.mxu1 %v733_v26  ;;  %863 = vmatprep.mubr.msk.f32.mxu1 %vm909_vm1, %v908_v0 }
  0x1e   :  { %853 = vmatmul.mubr.msk.f32.vlgmr.msra.gmra.mxu0 %vm41_vm0, %v996_v9  ;;  %864 = vmatmul.mubr.msk.f32.vlgmr.msra.gmra.mxu1 %vm41_vm0, %v1001_v10 }
  0x1f   :  { %866 = vmatprep.subr.mxu0 %v908_v0  ;;  %877 = vmatprep.subr.mxu1 %v908_v0 }
  0x20   :  { %867 = vmatpush3.msra.mxu0 %v752_v27  ;;  %878 = vmatpush3.msra.mxu1 %v748_v28 }
  0x21   :  { %868 = vmatprep.subr.mxu0 %v908_v0  ;;  %879 = vmatprep.subr.mxu1 %v908_v0 }
  0x22   :  { %869 = vmatpush3.msra.mxu0 %v751_v29  ;;  %880 = vmatpush3.msra.mxu1 %v747_v30 }
  0x23   :  { %870 = vmatprep.subr.mxu0 %v908_v0  ;;  %881 = vmatprep.subr.mxu1 %v908_v0 }
  0x24   :  { %871 = vmatpush3.msra.mxu0 %v750_v31  ;;  %882 = vmatpush3.msra.mxu1 %v746_v32 }
  0x25   :  { %872 = vmatprep.subr.mxu0 %v908_v0  ;;  %883 = vmatprep.subr.mxu1 %v908_v0 }
  0x26   :  { %873 = vmatpush3.msra.mxu0 %v749_v34  ;;  %874 = vmatprep.mubr.msk.f32.mxu0 %vm909_vm1, %v908_v0 }
  0x27   :  { %884 = vmatpush3.msra.mxu1 %v745_v35  ;;  %885 = vmatprep.mubr.msk.f32.mxu1 %vm909_vm1, %v908_v0 }
  0x28   :  { %875 = vmatmul.mubr.msk.f32.vlgmr.msra.gmra.mxu0 %vm41_vm0, %v996_v9  ;;  %886 = vmatmul.mubr.msk.f32.vlgmr.msra.gmra.mxu1 %vm41_vm0, %v1001_v10 }
  0x29   :  { %891 = vset.pattern.permute.xlu0 %v910_v36 }
  0x2a   :  { %703 = vperm.xlu0 %891, %v701_v37  }
  0xa5   :  { %v704_v14 = vpop.permute.xlu0 %703 }
  0xa6   :  { %vm705_vm3 = vcmp.eq.s32.totalorder %v704_v14, 1 }
  0xca   :  { %v111_v38 = vpop.f32.mrf.mxu0  ;;  %v184_v39 = vpop.f32.mrf.mxu1 }
  0xcb   :  { %v185_v42 = vadd.f32 %v184_v39, %v111_v38 }
  0xcc   :  { %v810_v40 = vpop.f32.mrf.mxu0  ;;  %v821_v41 = vpop.f32.mrf.mxu1 }
  0xcd   :  { %v195_v48 = vadd.f32 %v720_v43, %v185_v42 }
  0xcf   :  { %v757_v49 = vmul.f32 -1.442695, %v195_v48 }
  0xd1   :  { %892 = vpow2.f32 %v757_v49 }
  0xd4   :  { %v272_v44 = vpop.f32.mrf.mxu0  ;;  %v342_v45 = vpop.f32.mrf.mxu1 }
  0xd5   :  { %v343_v2 = vadd.f32 %v342_v45, %v272_v44 }
  0xd6   :  { %v832_v46 = vpop.f32.mrf.mxu0  ;;  %v843_v47 = vpop.f32.mrf.mxu1 }
  0xd7   :  { %v354_v6 = vadd.f32 %v732_v3, %v343_v2 }
  0xde   :  { %v431_v50 = vpop.f32.mrf.mxu0  ;;  %v501_v51 = vpop.f32.mrf.mxu1 }
  0xdf   :  { %v502_v53 = vadd.f32 %v501_v51, %v431_v50  ;;  %v893_v1 = vpop.eup %892 }
  0xe0   :  { %v854_v54 = vpop.f32.mrf.mxu0  ;;  %v865_v55 = vpop.f32.mrf.mxu1  ;;  %v676_v5 = vadd.f32 1.0, %v893_v1 }
  0xe1   :  { %v513_v56 = vadd.f32 %v744_v52, %v502_v53 }
  0xe3   :  { %v758_v57 = vmul.f32 -1.442695, %v513_v56 }
  0xe5   :  { %894 = vpow2.f32 %v758_v57 }
  0xe8   :  { %v590_v58 = vpop.f32.mrf.mxu0  ;;  %v660_v59 = vpop.f32.mrf.mxu1 }
  0xe9   :  { %v661_v61 = vadd.f32 %v660_v59, %v590_v58 }
  0xea   :  { %v876_v62 = vpop.f32.mrf.mxu0  ;;  %v887_v63 = vpop.f32.mrf.mxu1 }
  0xeb   :  { %v672_v0 = vadd.f32 %v756_v60, %v661_v61 }
  0xed   :  { %v759_v4 = vmul.f32 -1.442695, %v672_v0 }
  0xef   :  { %896 = vpow2.f32 %v759_v4 }
  0xf0   :  { %898 = vrcp.f32 %v676_v5 }
  0xf1   :  { %900 = vtanh.f32 %v354_v6 }
  0xf2   :  { %v895_v7 = vpop.eup %894 }
  0xf3   :  { %v682_v8 = vadd.f32 1.0, %v895_v7 }
  0xf5   :  { %902 = vrcp.f32 %v682_v8 }
  0xfc   :  { %v897_v9 = vpop.eup %896 }
  0xfd   :  { %v899_v10 = vpop.eup %898  ;;  %v688_v13 = vadd.f32 1.0, %v897_v9 }
  0xfe   :  { %v901_v12 = vpop.eup %900 }
  0xff   :  { %v695_v17 = vmul.f32 %v901_v12, %v899_v10  ;;  %904 = vrcp.f32 %v688_v13 }
 0x102   :  { %v903_v15 = vpop.eup %902 }
 0x103   :  { %v693_v16 = vmul.f32 %v903_v15, %v691_v11 }
 0x105   :  { %v696_v18 = vadd.f32 %v695_v17, %v693_v16 }
 0x107   :  { %906 = vtanh.f32 %v696_v18  ;;  %v706_v19 = vsel %vm705_vm3, %v696_v18, %v691_v11 }
 0x108   :  { %709 = vst.msk [vmem:[%s1167_s9] sm:$0xff] %vm41_vm0, %v706_v19 }
 0x10c   :  { %v905_v20 = vpop.eup %904 }
 0x114   :  { %v907_v21 = vpop.eup %906 }
 0x115   :  { %v698_v23 = vmul.f32 %v907_v21, %v905_v20 }
 0x117   :  { %v707_v24 = vsel %vm705_vm3, %v698_v23, %v692_v22 }
 0x118   :  { %708 = vst.msk [vmem:[%s1169_s8] sm:$0xff] %vm41_vm0, %v707_v24 }

</bundles_post_ra>
